<compile_context>
chip_gen: v7x
topology: tpu7x:2x2x1
jax: 0.10.0
libtpu: 0.0.40
codegen_flags: <defaults>
</compile_context>

<pallas_src>
import functools

import jax
import jax.numpy as jnp
from jax.experimental import pallas as pl
from jax.experimental.pallas import tpu as pltpu


# Per-operand tile budget: 3 operand streams x 2 pipeline buffers x 2 MiB
# = 12 MiB of VMEM, which fits the default scoped limit on every generation
# (16 MiB on v5e, 32 MiB on v6e/v7x) with headroom.
_TILE_BUDGET_BYTES = 2 * 1024 * 1024
# Above this total size, prefer >= 2 blocks along rows so v7x's two TensorCores
# both stream even when one tile would fit.
_SPLIT_THRESHOLD_BYTES = 4 * 1024 * 1024


def _choose_tile_r(R: int, C: int, itemsize: int) -> int:
    """Largest full-width (whole-C) row tile within the VMEM budget."""
    bytes_per_row = max(1, C * itemsize)
    max_rows = max(8, _TILE_BUDGET_BYTES // bytes_per_row)
    if R <= max_rows:
        # Whole array fits one tile.  For big buffers still split in half so
        # both v7x TensorCores get work; tiny buffers stay as a single block
        # to avoid the fixed ~0.35 us per-grid-step overhead.
        if R % 16 == 0 and R * bytes_per_row > _SPLIT_THRESHOLD_BYTES:
            return R // 2
        return R
    # Largest multiple of 8 that divides R and stays within the budget.
    tr = (max_rows // 8) * 8
    while tr >= 8:
        if R % tr == 0:
            return tr
        tr -= 8
    # Ragged R: fall back to one whole-array block (always a legal block).
    return R


def _ema_kernel(step_ref, x_ref, rm_ref, out_ref, *, momentum):
    # step_ref is a scalar-prefetched int32 in SMEM.  step == 0 means "copy x"
    # exactly (must not depend on the tracked buffer's prior contents).
    is_first = step_ref[0] == 0
    x = x_ref[...].astype(jnp.float32)
    rm = rm_ref[...].astype(jnp.float32)
    m = jnp.float32(momentum)
    blended = m * rm + (1.0 - m) * x
    out_ref[...] = jnp.where(is_first, x, blended).astype(out_ref.dtype)


def _as_2d(a):
    """Lane-dense 2-D view: (prod(leading dims), last dim)."""
    if a.ndim == 0:
        return a.reshape((1, 1))
    if a.ndim == 1:
        return a.reshape((1, a.shape[0]))
    lead = 1
    for d in a.shape[:-1]:
        lead *= d
    return a.reshape((lead, a.shape[-1]))


def ema_forward(x, running_mean, step, *, momentum=0.9, training=True):
    """Returns (output, new_running_mean, new_step) matching EMA.forward."""
    if not training:
        return running_mean, running_mean, step

    assert x.shape == running_mean.shape, "x must match tracked buffer shape"
    orig_shape = running_mean.shape

    x2 = _as_2d(x)
    rm2 = _as_2d(running_mean)
    R, C = x2.shape
    tile_r = _choose_tile_r(R, C, jnp.dtype(running_mean.dtype).itemsize)
    grid_r = pl.cdiv(R, tile_r)

    kernel = functools.partial(_ema_kernel, momentum=momentum)

    new_rm2 = pl.pallas_call(
        kernel,
        out_shape=jax.ShapeDtypeStruct((R, C), running_mean.dtype),
        grid_spec=pltpu.PrefetchScalarGridSpec(
            num_scalar_prefetch=1,
            grid=(grid_r,),
            in_specs=[
                pl.BlockSpec((tile_r, C), lambda i, step: (i, 0)),   # x
                pl.BlockSpec((tile_r, C), lambda i, step: (i, 0)),   # running_mean
            ],
            out_specs=pl.BlockSpec((tile_r, C), lambda i, step: (i, 0)),
        ),
        # In-place update of the tracked state:
        # arg 0 = prefetched step, arg 1 = x, arg 2 = running_mean -> output 0.
        input_output_aliases={2: 0},
        compiler_params=pltpu.CompilerParams(
            dimension_semantics=("parallel",),
            vmem_limit_bytes=32 * 1024 * 1024,
        ),
    )(step.astype(jnp.int32).reshape((1,)), x2, rm2)

    new_rm = new_rm2.reshape(orig_shape)
    new_step = step + 1
    # forward() returns the (possibly updated) running mean.
    return new_rm, new_rm, new_step


if __name__ == "__main__":
    key = jax.random.PRNGKey(0)
    k1, k2, k3, k4, k5, k6 = jax.random.split(key, 6)

    momentum = 0.9

    # ---- Case 1: 4-D tracked buffer [2, 4, 16, 16] (module-style shape) ----
    shape1 = (2, 4, 16, 16)
    running_mean = jnp.full(shape1, jnp.nan, dtype=jnp.float32)  # torch.empty analogue
    step = jnp.array(0, dtype=jnp.int32)

    x0 = jax.random.normal(k1, shape1, dtype=jnp.float32)
    x1 = jax.random.normal(k2, shape1, dtype=jnp.float32)

    # Step 0: running_mean <- x0 (exact copy, ignores NaN-filled buffer).
    out0, running_mean, step = ema_forward(
        x0, running_mean, step, momentum=momentum, training=True)
    out0 = jax.block_until_ready(out0)

    # Step 1: running_mean <- momentum * running_mean + (1 - momentum) * x1
    out1, running_mean, step = ema_forward(
        x1, running_mean, step, momentum=momentum, training=True)
    out1 = jax.block_until_ready(out1)

    # Eval mode: returns running_mean unchanged.
    out_eval, running_mean, step = ema_forward(
        x0, running_mean, step, momentum=momentum, training=False)
    out_eval = jax.block_until_ready(out_eval)

    ref0 = x0
    ref1 = momentum * ref0 + (1.0 - momentum) * x1
    assert jnp.array_equal(out0, ref0), "step-0 copy must be exact"
    assert jnp.allclose(out1, ref1, atol=1e-5), "EMA blend mismatch"
    assert jnp.allclose(out_eval, ref1, atol=1e-5), "eval passthrough mismatch"
    assert int(step) == 2

    # ---- Case 2: aligned 2-D tracked buffer [16, 256] ----
    R, C = 16, 256
    rm2 = jnp.zeros((R, C), dtype=jnp.float32)
    step2 = jnp.array(0, dtype=jnp.int32)
    y0 = jax.random.normal(k3, (R, C), dtype=jnp.float32)
    y1 = jax.random.normal(k4, (R, C), dtype=jnp.float32)

    o0, rm2, step2 = ema_forward(y0, rm2, step2, momentum=momentum, training=True)
    o1, rm2, step2 = ema_forward(y1, rm2, step2, momentum=momentum, training=True)
    o1 = jax.block_until_ready(o1)

    assert jnp.array_equal(o0, y0), "step-0 copy must be exact (2-D case)"
    ref2 = momentum * y0 + (1.0 - momentum) * y1
    assert jnp.allclose(o1, ref2, atol=1e-5), "2-D EMA blend mismatch"
    assert int(step2) == 2

    # ---- Case 3: ragged shape [12, 96], uninitialized (NaN) tracked buffer ----
    R3, C3 = 12, 96
    rm3 = jnp.full((R3, C3), jnp.nan, dtype=jnp.float32)
    step3 = jnp.array(0, dtype=jnp.int32)
    z0 = jax.random.normal(k5, (R3, C3), dtype=jnp.float32)
    z1 = jax.random.normal(k6, (R3, C3), dtype=jnp.float32)

    p0, rm3, step3 = ema_forward(z0, rm3, step3, momentum=momentum, training=True)
    p1, rm3, step3 = ema_forward(z1, rm3, step3, momentum=momentum, training=True)
    p1 = jax.block_until_ready(p1)

    assert jnp.array_equal(p0, z0), "step-0 must ignore uninitialized buffer"
    ref3 = momentum * z0 + (1.0 - momentum) * z1
    assert jnp.allclose(p1, ref3, atol=1e-5), "ragged EMA blend mismatch"
    assert int(step3) == 2

    print("KERNEL_OK")
</pallas_src>

<mosaic_0001>
module attributes {stable_mosaic.version = 11 : i64} {
  func.func @_ema_kernel(%arg0: i32, %arg1: memref<1xi32, #tpu.memory_space<smem>>, %arg2: memref<128x16xf32, #tpu.memory_space<vmem>>, %arg3: memref<128x16xf32, #tpu.memory_space<vmem>>, %arg4: memref<128x16xf32, #tpu.memory_space<vmem>>) attributes {dimension_semantics = [#tpu.dimension_semantics<parallel>], iteration_bounds = array<i64: 1>, scalar_prefetch = 1 : i64, scratch_operands = 0 : i64, tpu.core_type = #tpu.core_type<tc>, window_params = [{transform_indices = @transform_0, window_bounds = array<i64: 128, 16>}, {transform_indices = @transform_1, window_bounds = array<i64: 128, 16>}, {transform_indices = @transform_2, window_bounds = array<i64: 128, 16>}]} {
    %c0 = arith.constant 0 : index
    %0 = memref.load %arg1[%c0] : memref<1xi32, #tpu.memory_space<smem>>
    %c0_i32 = arith.constant 0 : i32
    %1 = arith.cmpi eq, %0, %c0_i32 : i32
    %c0_0 = arith.constant 0 : index
    %c0_1 = arith.constant 0 : index
    %2 = vector.load %arg2[%c0_0, %c0_1] : memref<128x16xf32, #tpu.memory_space<vmem>>, vector<128x16xf32>
    %c0_2 = arith.constant 0 : index
    %c0_3 = arith.constant 0 : index
    %3 = vector.load %arg3[%c0_2, %c0_3] : memref<128x16xf32, #tpu.memory_space<vmem>>, vector<128x16xf32>
    %cst = arith.constant 0.899999976 : f32
    %4 = vector.broadcast %cst : f32 to vector<128x16xf32>
    %5 = arith.mulf %4, %3 : vector<128x16xf32>
    %cst_4 = arith.constant 1.000000e+00 : f32
    %cst_5 = arith.constant 0.899999976 : f32
    %6 = arith.subf %cst_4, %cst_5 : f32
    %7 = vector.broadcast %6 : f32 to vector<128x16xf32>
    %8 = arith.mulf %7, %2 : vector<128x16xf32>
    %9 = arith.addf %5, %8 : vector<128x16xf32>
    %10 = arith.select %1, %2, %9 : vector<128x16xf32>
    %c0_6 = arith.constant 0 : index
    %c0_7 = arith.constant 0 : index
    %11 = vector.load %arg4[%c0_6, %c0_7] : memref<128x16xf32, #tpu.memory_space<vmem>>, vector<128x16xf32>
    tpu.vector_store %arg4[%c0_6, %c0_7], %10 {strides = array<i32>} : memref<128x16xf32, #tpu.memory_space<vmem>>, vector<128x16xf32>,
    return
  }
  func.func @transform_0(%arg0: i32, %arg1: memref<1xi32, #tpu.memory_space<smem>>) -> (i32, i32) {
    %c0_i32 = arith.constant 0 : i32
    %c0_i32_0 = arith.constant 0 : i32
    return %arg0, %c0_i32 : i32, i32
  }
  func.func @transform_1(%arg0: i32, %arg1: memref<1xi32, #tpu.memory_space<smem>>) -> (i32, i32) {
    %c0_i32 = arith.constant 0 : i32
    %c0_i32_0 = arith.constant 0 : i32
    return %arg0, %c0_i32 : i32, i32
  }
  func.func @transform_2(%arg0: i32, %arg1: memref<1xi32, #tpu.memory_space<smem>>) -> (i32, i32) {
    %c0_i32 = arith.constant 0 : i32
    %c0_i32_0 = arith.constant 0 : i32
    return %arg0, %c0_i32 : i32, i32
  }
}

</mosaic_0001>

<bundles_post_ra>
// kernel: tpu_custom_call.1
= control target key start
LH: loop header
LB: loop body
LE: loop exit
PB: predicated region body
PF: predicated region fallthrough
CT: control target
= control target key end

     0   :  { %vm114_vm0 = vcmask 130048   ;;  %s354_s0 = inlined_call_operand.<no memory space> [shape: s32[1], index: 0, kind: input, shape index: {}]   ;;  %s355_s1 = inlined_call_operand.vmem [shape: f32[128,16], index: 1, kind: input, shape index: {}]   ;;  %s356_s2 = inlined_call_operand.vmem [shape: f32[128,16], index: 2, kind: input, shape index: {}, may-alias: {2,3}]   ;;  %s357_s3 = inlined_call_operand.vmem [shape: f32[128,16], index: 3, kind: output, shape index: {}, may-alias: {2,3}]  }
   0x1   :  { %p14_p0 = scmp.eq.s32.totalorder %s354_s0, 0  ;;  %v15_v0 = vld [vmem:[%s355_s1] sm:$0xff]  ;;  %v16_v2 = vld [vmem:[%s355_s1 + $0x8] sm:$0xff]  ;;  %v17_v6 = vld [vmem:[%s355_s1 + $0x10] sm:$0xff] }
   0x2   :  { %v31_v1 = vld [vmem:[%s356_s2] sm:$0xff]  ;;  %v63_v4 = vmul.f32 0.100000024, %v15_v0  ;;  %v32_v5 = vld [vmem:[%s356_s2 + $0x8] sm:$0xff]  ;;  %v64_v8 = vmul.f32 0.100000024, %v16_v2 }
   0x3   :  { %v47_v3 = vmul.f32 0.9, %v31_v1  ;;  %s95_s23 = scalar_select %p14_p0, 1, 0  ;;  %v48_v7 = vmul.f32 0.9, %v32_v5 }
   0x4   :  { %v33_v10 = vld [vmem:[%s356_s2 + $0x10] sm:$0xff]  ;;  %v65_v11 = vmul.f32 0.100000024, %v17_v6  ;;  %v18_v12 = vld [vmem:[%s355_s1 + $0x18] sm:$0xff]  ;;  %v19_v18 = vld [vmem:[%s355_s1 + $0x20] sm:$0xff] }
   0x5   :  { %v79_v9 = vadd.f32 %v63_v4, %v47_v3  ;;  %v34_v13 = vld [vmem:[%s356_s2 + $0x18] sm:$0xff]  ;;  %v96_v14 = vstv %s95_s23  ;;  %v80_v15 = vadd.f32 %v64_v8, %v48_v7  ;;  %v49_v16 = vmul.f32 0.9, %v33_v10  ;;  %v35_v19 = vld [vmem:[%s356_s2 + $0x20] sm:$0xff]  ;;  %v20_v23 = vld [vmem:[%s355_s1 + $0x28] sm:$0xff] }
   0x6   :  { %v50_v17 = vmul.f32 0.9, %v34_v13  ;;  %vm188_vm1 = vcmp.eq.s32.totalorder %v96_v14, 1  ;;  %v66_v21 = vmul.f32 0.100000024, %v18_v12  ;;  %v36_v28 = vld [vmem:[%s356_s2 + $0x28] sm:$0xff] }
   0x7   :  { %v51_v22 = vmul.f32 0.9, %v35_v19  ;;  %v98_v24 = vsel %vm188_vm1, %v15_v0, %v79_v9  ;;  %v99_v25 = vsel %vm188_vm1, %v16_v2, %v80_v15  ;;  %v81_v26 = vadd.f32 %v65_v11, %v49_v16  ;;  %v21_v29 = vld [vmem:[%s355_s1 + $0x30] sm:$0xff]  ;;  %v22_v38 = vld [vmem:[%s355_s1 + $0x38] sm:$0xff]  ;;  %v23_v40 = vld [vmem:[%s355_s1 + $0x40] sm:$0xff] }
   0x8   :  { %v67_v27 = vmul.f32 0.100000024, %v19_v18  ;;  %v37_v30 = vld [vmem:[%s356_s2 + $0x30] sm:$0xff]  ;;  %v82_v31 = vadd.f32 %v66_v21, %v50_v17  ;;  %v52_v32 = vmul.f32 0.9, %v36_v28  ;;  %v24_v46 = vld [vmem:[%s355_s1 + $0x48] sm:$0xff] }
   0x9   :  { %115 = vst.msk [vmem:[%s357_s3] sm:$0xff] %vm114_vm0, %v98_v24  ;;  %116 = vst.msk [vmem:[%s357_s3 + $0x8] sm:$0xff] %vm114_vm0, %v99_v25  ;;  %v68_v33 = vmul.f32 0.100000024, %v20_v23  ;;  %v53_v34 = vmul.f32 0.9, %v37_v30  ;;  %v100_v35 = vsel %vm188_vm1, %v17_v6, %v81_v26 }
   0xa   :  { %v83_v36 = vadd.f32 %v67_v27, %v51_v22  ;;  %v69_v37 = vmul.f32 0.100000024, %v21_v29  ;;  %v101_v41 = vsel %vm188_vm1, %v18_v12, %v82_v31  ;;  %v70_v44 = vmul.f32 0.100000024, %v22_v38  ;;  %v25_v52 = vld [vmem:[%s355_s1 + $0x50] sm:$0xff]  ;;  %v26_v58 = vld [vmem:[%s355_s1 + $0x58] sm:$0xff] }
   0xb   :  { %v84_v42 = vadd.f32 %v68_v33, %v52_v32  ;;  %v71_v50 = vmul.f32 0.100000024, %v23_v40  ;;  %v72_v56 = vmul.f32 0.100000024, %v24_v46  ;;  %v73_v62 = vmul.f32 0.100000024, %v25_v52 }
   0xc   :  { %v102_v47 = vsel %vm188_vm1, %v19_v18, %v83_v36  ;;  %v85_v48 = vadd.f32 %v69_v37, %v53_v34  ;;  %v27_v0 = vld [vmem:[%s355_s1 + $0x60] sm:$0xff]  ;;  %v74_v4 = vmul.f32 0.100000024, %v26_v58  ;;  %v28_v6 = vld [vmem:[%s355_s1 + $0x68] sm:$0xff]  ;;  %v29_v12 = vld [vmem:[%s355_s1 + $0x70] sm:$0xff] }
   0xd   :  { %v103_v53 = vsel %vm188_vm1, %v20_v23, %v84_v42  ;;  %v75_v10 = vmul.f32 0.100000024, %v27_v0  ;;  %v76_v16 = vmul.f32 0.100000024, %v28_v6  ;;  %v30_v18 = vld [vmem:[%s355_s1 + $0x78] sm:$0xff] }
   0xe   :  { %v104_v59 = vsel %vm188_vm1, %v21_v29, %v85_v48  ;;  %v77_v23 = vmul.f32 0.100000024, %v29_v12  ;;  %v78_v28 = vmul.f32 0.100000024, %v30_v18 }
  0x10   :  { %v38_v39 = vld [vmem:[%s356_s2 + $0x38] sm:$0xff] }
  0x11   :  { %117 = vst.msk [vmem:[%s357_s3 + $0x10] sm:$0xff] %vm114_vm0, %v100_v35  ;;  %v54_v43 = vmul.f32 0.9, %v38_v39 }
  0x13   :  { %v86_v54 = vadd.f32 %v70_v44, %v54_v43 }
  0x15   :  { %v105_v1 = vsel %vm188_vm1, %v22_v38, %v86_v54 }
  0x18   :  { %v39_v45 = vld [vmem:[%s356_s2 + $0x40] sm:$0xff] }
  0x19   :  { %118 = vst.msk [vmem:[%s357_s3 + $0x18] sm:$0xff] %vm114_vm0, %v101_v41  ;;  %v55_v49 = vmul.f32 0.9, %v39_v45 }
  0x1b   :  { %v87_v60 = vadd.f32 %v71_v50, %v55_v49 }
  0x1d   :  { %v106_v7 = vsel %vm188_vm1, %v23_v40, %v87_v60 }
  0x20   :  { %v40_v51 = vld [vmem:[%s356_s2 + $0x48] sm:$0xff] }
  0x21   :  { %119 = vst.msk [vmem:[%s357_s3 + $0x20] sm:$0xff] %vm114_vm0, %v102_v47  ;;  %v56_v55 = vmul.f32 0.9, %v40_v51 }
  0x23   :  { %v88_v2 = vadd.f32 %v72_v56, %v56_v55 }
  0x25   :  { %v107_v13 = vsel %vm188_vm1, %v24_v46, %v88_v2 }
  0x28   :  { %v41_v57 = vld [vmem:[%s356_s2 + $0x50] sm:$0xff] }
  0x29   :  { %120 = vst.msk [vmem:[%s357_s3 + $0x28] sm:$0xff] %vm114_vm0, %v103_v53  ;;  %v57_v61 = vmul.f32 0.9, %v41_v57 }
  0x2b   :  { %v89_v8 = vadd.f32 %v73_v62, %v57_v61 }
  0x2d   :  { %v108_v19 = vsel %vm188_vm1, %v25_v52, %v89_v8 }
  0x30   :  { %v42_v63 = vld [vmem:[%s356_s2 + $0x58] sm:$0xff] }
  0x31   :  { %121 = vst.msk [vmem:[%s357_s3 + $0x30] sm:$0xff] %vm114_vm0, %v104_v59  ;;  %v58_v3 = vmul.f32 0.9, %v42_v63 }
  0x33   :  { %v90_v14 = vadd.f32 %v74_v4, %v58_v3 }
  0x35   :  { %v109_v25 = vsel %vm188_vm1, %v26_v58, %v90_v14 }
  0x38   :  { %v43_v5 = vld [vmem:[%s356_s2 + $0x60] sm:$0xff] }
  0x39   :  { %122 = vst.msk [vmem:[%s357_s3 + $0x38] sm:$0xff] %vm114_vm0, %v105_v1  ;;  %v59_v9 = vmul.f32 0.9, %v43_v5 }
  0x3b   :  { %v91_v21 = vadd.f32 %v75_v10, %v59_v9 }
  0x3d   :  { %v110_v29 = vsel %vm188_vm1, %v27_v0, %v91_v21 }
  0x40   :  { %v44_v11 = vld [vmem:[%s356_s2 + $0x68] sm:$0xff] }
  0x41   :  { %123 = vst.msk [vmem:[%s357_s3 + $0x40] sm:$0xff] %vm114_vm0, %v106_v7  ;;  %v60_v15 = vmul.f32 0.9, %v44_v11 }
  0x43   :  { %v92_v26 = vadd.f32 %v76_v16, %v60_v15 }
  0x45   :  { %v111_v31 = vsel %vm188_vm1, %v28_v6, %v92_v26 }
  0x48   :  { %v45_v17 = vld [vmem:[%s356_s2 + $0x70] sm:$0xff] }
  0x49   :  { %124 = vst.msk [vmem:[%s357_s3 + $0x48] sm:$0xff] %vm114_vm0, %v107_v13  ;;  %v61_v22 = vmul.f32 0.9, %v45_v17 }
  0x4b   :  { %v93_v30 = vadd.f32 %v77_v23, %v61_v22 }
  0x4d   :  { %v112_v33 = vsel %vm188_vm1, %v29_v12, %v93_v30 }
  0x50   :  { %v46_v24 = vld [vmem:[%s356_s2 + $0x78] sm:$0xff] }
  0x51   :  { %125 = vst.msk [vmem:[%s357_s3 + $0x50] sm:$0xff] %vm114_vm0, %v108_v19  ;;  %v62_v27 = vmul.f32 0.9, %v46_v24  ;;  %126 = vst.msk [vmem:[%s357_s3 + $0x58] sm:$0xff] %vm114_vm0, %v109_v25 }
  0x52   :  { %127 = vst.msk [vmem:[%s357_s3 + $0x60] sm:$0xff] %vm114_vm0, %v110_v29  ;;  %128 = vst.msk [vmem:[%s357_s3 + $0x68] sm:$0xff] %vm114_vm0, %v111_v31 }
  0x53   :  { %v94_v32 = vadd.f32 %v78_v28, %v62_v27  ;;  %129 = vst.msk [vmem:[%s357_s3 + $0x70] sm:$0xff] %vm114_vm0, %v112_v33 }
  0x55   :  { %v113_v34 = vsel %vm188_vm1, %v30_v18, %v94_v32 }
  0x56   :  { %130 = vst.msk [vmem:[%s357_s3 + $0x78] sm:$0xff] %vm114_vm0, %v113_v34 }

</bundles_post_ra>
